<compile_context>
chip_gen: v6e
topology: v6e:2x2x1
jax: 0.10.0
libtpu: 0.0.40
codegen_flags: <defaults>
</compile_context>

<pallas_src>
import functools

import jax
import jax.numpy as jnp
from jax.experimental import pallas as pl
from jax.experimental.pallas import tpu as pltpu

EPS = 1e-5


def _interim_block_kernel(x_ref, mask_ref, w1_ref, w2_ref, bn_ref, out_ref,
                          *, n, h, w, cin, cout):
    """Fused conv1 -> bn1 -> relu1 -> conv2(+identity) -> bn2 -> relu2.

    Layout: channels on sublanes; flattened zero-padded spatial grid
    n*(h+2)*(w+2) (lane-padded to a multiple of 128) on lanes.
    """
    wp = w + 2
    m_lanes = x_ref.shape[1]           # lane width (multiple of 128)
    inv_m = 1.0 / float(n * h * w)     # BN averages over real pixels only

    x = x_ref[...]                     # (cin, m_lanes) f32
    mask = mask_ref[...]               # (1,  m_lanes) f32, 1.0 on real pixels

    # Tap (ky, kx) of a padding=1 3x3 conv reads input position
    # p + (ky-1)*wp + (kx-1) for output position p (flat padded-grid index).
    offsets = [(ky - 1) * wp + (kx - 1) for ky in range(3) for kx in range(3)]

    def tap_stack(v, extra=None):
        # Nine rolled copies of v stacked on sublanes -> one fused MXU operand.
        # Roll wrap-around only affects lanes within wp+1 of the buffer ends,
        # all of which are border / lane-pad (masked) positions, so interior
        # results are bit-identical to the shifted-slice formulation.
        pieces = []
        for off in offsets:
            if off == 0:
                pieces.append(v)
            else:
                pieces.append(pltpu.roll(v, shift=(-off) % m_lanes, axis=1))
        if extra is not None:
            pieces.append(extra)       # identity (1x1 conv) rows folded in
        return jnp.concatenate(pieces, axis=0)

    def bn_relu(v, gamma, beta):
        # Training-mode batch statistics (biased variance, eps=1e-5) over real
        # pixels only, mean-centred two-pass for numerical robustness.
        mean = jnp.sum(v * mask, axis=1, keepdims=True) * inv_m
        t = v - mean
        d = t * mask
        var = jnp.sum(d * d, axis=1, keepdims=True) * inv_m
        scale = gamma * jax.lax.rsqrt(var + EPS)       # EUP rsqrt
        return jnp.maximum(t * scale + beta, 0.0)

    g1 = bn_ref[0 * cout:1 * cout, :]
    b1 = bn_ref[1 * cout:2 * cout, :]
    g2 = bn_ref[2 * cout:3 * cout, :]
    b2 = bn_ref[3 * cout:4 * cout, :]

    # conv1: single (cout, 9*cin) @ (9*cin, M) matmul, bf16 operands, f32 acc.
    stack1 = tap_stack(x).astype(jnp.bfloat16)
    acc1 = jnp.dot(w1_ref[...], stack1, preferred_element_type=jnp.float32)
    # Masking the border gives exactly the zero padding conv2 needs.
    y = bn_relu(acc1, g1, b1) * mask

    # conv2 + identity: single (cout, 9*cout+cin) @ (9*cout+cin, M) matmul.
    stack2 = tap_stack(y, extra=x).astype(jnp.bfloat16)
    acc2 = jnp.dot(w2_ref[...], stack2, preferred_element_type=jnp.float32)
    out_ref[...] = bn_relu(acc2, g2, b2)


def interim_block_forward(x_nchw, params):
    """Forward of _Interim_Block. Input/output in PyTorch NCHW convention."""
    n, cin, h, w = x_nchw.shape
    cout = params["w_expand"].shape[0]
    hp, wp = h + 2, w + 2
    m_pad = n * hp * wp
    m_lanes = ((m_pad + 127) // 128) * 128      # lane-align flat spatial axis

    # channels -> sublanes; flattened zero-padded (n, hp, wp) grid -> lanes.
    x_c = jnp.transpose(x_nchw, (1, 0, 2, 3)).astype(jnp.float32)
    x_flat = jnp.pad(x_c, ((0, 0), (0, 0), (1, 1), (1, 1))).reshape(cin, m_pad)
    x_flat = jnp.pad(x_flat, ((0, 0), (0, m_lanes - m_pad)))

    # real-pixel mask over the flat padded grid (0 on border and lane pad).
    ih = (jnp.arange(hp) >= 1) & (jnp.arange(hp) <= h)
    iw = (jnp.arange(wp) >= 1) & (jnp.arange(wp) <= w)
    mask = jnp.broadcast_to((ih[:, None] & iw[None, :])[None], (n, hp, wp))
    mask = mask.reshape(1, m_pad).astype(jnp.float32)
    mask = jnp.pad(mask, ((0, 0), (0, m_lanes - m_pad)))

    # Fused weights: taps flattened tap-major / channel-minor to match the
    # sublane stack order; identity (conv_expand) columns appended to conv2.
    w1f = jnp.transpose(params["w1"], (0, 2, 3, 1)).reshape(cout, 9 * cin)
    w2f = jnp.transpose(params["w2"], (0, 2, 3, 1)).reshape(cout, 9 * cout)
    wexp = params["w_expand"][:, :, 0, 0]                       # (cout, cin)
    w1_bf = w1f.astype(jnp.bfloat16)                            # (cout, 9*cin)
    w2_bf = jnp.concatenate([w2f, wexp], axis=1).astype(jnp.bfloat16)

    # Stacked BN affine params: [gamma1; beta1; gamma2; beta2] -> (4*cout, 1).
    bn = jnp.concatenate([params["gamma1"], params["beta1"],
                          params["gamma2"], params["beta2"]])
    bn = bn.reshape(4 * cout, 1).astype(jnp.float32)

    vmem = pl.BlockSpec(memory_space=pltpu.MemorySpace.VMEM)
    kernel = functools.partial(_interim_block_kernel,
                               n=n, h=h, w=w, cin=cin, cout=cout)
    out_flat = pl.pallas_call(
        kernel,
        out_shape=jax.ShapeDtypeStruct((cout, m_lanes), jnp.float32),
        in_specs=[vmem] * 5,
        out_specs=vmem,
        compiler_params=pltpu.CompilerParams(
            vmem_limit_bytes=32 * 1024 * 1024),
    )(x_flat, mask, w1_bf, w2_bf, bn)

    # lane-dense kernel output -> drop lane pad + border -> back to NCHW.
    out = out_flat[:, :m_pad].reshape(cout, n, hp, wp)[:, :, 1:1 + h, 1:1 + w]
    return jnp.transpose(out, (1, 0, 2, 3))


def _reference_forward(x, params):
    """Pure-JAX reference of the PyTorch forward (training-mode BN)."""
    dn = ("NCHW", "OIHW", "NCHW")

    def conv(v, wt, pad):
        return jax.lax.conv_general_dilated(v, wt, (1, 1), pad,
                                            dimension_numbers=dn)

    def bn_relu(v, g, b):
        mean = jnp.mean(v, axis=(0, 2, 3), keepdims=True)
        var = jnp.mean((v - mean) ** 2, axis=(0, 2, 3), keepdims=True)
        out = (v - mean) * jax.lax.rsqrt(var + EPS) \
            * g.reshape(1, -1, 1, 1) + b.reshape(1, -1, 1, 1)
        return jnp.maximum(out, 0.0)

    identity = conv(x, params["w_expand"], [(0, 0), (0, 0)])
    y = bn_relu(conv(x, params["w1"], [(1, 1), (1, 1)]),
                params["gamma1"], params["beta1"])
    z = conv(y, params["w2"], [(1, 1), (1, 1)]) + identity
    return bn_relu(z, params["gamma2"], params["beta2"])


def init_params(key, inc=4, outc=4):
    """Deterministic synthetic parameters matching nn.Module shapes."""
    k1, k2, k3 = jax.random.split(key, 3)

    def kaiming(k, shape, fan_in):
        return jax.random.normal(k, shape, jnp.float32) * (2.0 / fan_in) ** 0.5

    return {
        "w_expand": kaiming(k1, (outc, inc, 1, 1), inc),         # conv_expand.weight
        "w1": kaiming(k2, (outc, inc, 3, 3), inc * 9),           # conv1.weight
        "w2": kaiming(k3, (outc, outc, 3, 3), outc * 9),         # conv2.weight
        "gamma1": jnp.ones((outc,), jnp.float32),                # bn1.weight
        "beta1": jnp.zeros((outc,), jnp.float32),                # bn1.bias
        "gamma2": jnp.ones((outc,), jnp.float32),                # bn2.weight
        "beta2": jnp.zeros((outc,), jnp.float32),                # bn2.bias
    }
    # TODO(synk): BatchNorm running_mean/running_var buffer updates (a training-
    # mode side effect that does not affect the returned tensor) are not modeled.


if __name__ == "__main__":
    key = jax.random.PRNGKey(0)
    kx, kp = jax.random.split(key)

    N, C, H, W = 2, 4, 16, 16            # inc = outc = 4
    x = jax.random.normal(kx, (N, C, H, W), jnp.float32)
    params = init_params(kp, inc=C, outc=C)

    out = interim_block_forward(x, params)
    jax.block_until_ready(out)
    assert out.shape == (N, C, H, W)

    ref = _reference_forward(x, params)
    err = float(jnp.max(jnp.abs(out - ref)))
    # bf16 MXU operands vs an all-f32 reference => loose-ish tolerance.
    assert err < 5e-2, f"mismatch vs reference: max abs err = {err}"
    print("KERNEL_OK")
</pallas_src>

<mosaic_0001>
module attributes {stable_mosaic.version = 11 : i64} {
  func.func @_interim_block_kernel(%arg0: memref<4x768xf32, #tpu.memory_space<vmem>>, %arg1: memref<1x768xf32, #tpu.memory_space<vmem>>, %arg2: memref<4x36xbf16, #tpu.memory_space<vmem>>, %arg3: memref<4x40xbf16, #tpu.memory_space<vmem>>, %arg4: memref<16x1xf32, #tpu.memory_space<vmem>>, %arg5: memref<4x768xf32, #tpu.memory_space<vmem>>) attributes {dimension_semantics = [], scalar_prefetch = 0 : i64, scratch_operands = 0 : i64, tpu.core_type = #tpu.core_type<tc>} {
    %c0 = arith.constant 0 : index
    %c0_0 = arith.constant 0 : index
    %0 = vector.load %arg0[%c0, %c0_0] : memref<4x768xf32, #tpu.memory_space<vmem>>, vector<4x768xf32>
    %c0_1 = arith.constant 0 : index
    %c0_2 = arith.constant 0 : index
    %1 = vector.load %arg1[%c0_1, %c0_2] : memref<1x768xf32, #tpu.memory_space<vmem>>, vector<1x768xf32>
    %c0_3 = arith.constant 0 : index
    %c0_4 = arith.constant 0 : index
    %2 = vector.load %arg4[%c0_3, %c0_4] : memref<16x1xf32, #tpu.memory_space<vmem>>, vector<4x1xf32>
    %c4 = arith.constant 4 : index
    %c0_5 = arith.constant 0 : index
    %3 = vector.load %arg4[%c4, %c0_5] : memref<16x1xf32, #tpu.memory_space<vmem>>, vector<4x1xf32>
    %c8 = arith.constant 8 : index
    %c0_6 = arith.constant 0 : index
    %4 = vector.load %arg4[%c8, %c0_6] : memref<16x1xf32, #tpu.memory_space<vmem>>, vector<4x1xf32>
    %c12 = arith.constant 12 : index
    %c0_7 = arith.constant 0 : index
    %5 = vector.load %arg4[%c12, %c0_7] : memref<16x1xf32, #tpu.memory_space<vmem>>, vector<4x1xf32>
    %c19_i32 = arith.constant 19 : i32
    %6 = tpu.dynamic_rotate %0 by %c19_i32 dim 1 : vector<4x768xf32>, i32 -> vector<4x768xf32>
    %c18_i32 = arith.constant 18 : i32
    %7 = tpu.dynamic_rotate %0 by %c18_i32 dim 1 : vector<4x768xf32>, i32 -> vector<4x768xf32>
    %c17_i32 = arith.constant 17 : i32
    %8 = tpu.dynamic_rotate %0 by %c17_i32 dim 1 : vector<4x768xf32>, i32 -> vector<4x768xf32>
    %c1_i32 = arith.constant 1 : i32
    %9 = tpu.dynamic_rotate %0 by %c1_i32 dim 1 : vector<4x768xf32>, i32 -> vector<4x768xf32>
    %c767_i32 = arith.constant 767 : i32
    %10 = tpu.dynamic_rotate %0 by %c767_i32 dim 1 : vector<4x768xf32>, i32 -> vector<4x768xf32>
    %c751_i32 = arith.constant 751 : i32
    %11 = tpu.dynamic_rotate %0 by %c751_i32 dim 1 : vector<4x768xf32>, i32 -> vector<4x768xf32>
    %c750_i32 = arith.constant 750 : i32
    %12 = tpu.dynamic_rotate %0 by %c750_i32 dim 1 : vector<4x768xf32>, i32 -> vector<4x768xf32>
    %c749_i32 = arith.constant 749 : i32
    %13 = tpu.dynamic_rotate %0 by %c749_i32 dim 1 : vector<4x768xf32>, i32 -> vector<4x768xf32>
    %14 = tpu.concatenate %6, %7, %8, %9, %0, %10, %11, %12, %13 in 0 : vector<4x768xf32>, vector<4x768xf32>, vector<4x768xf32>, vector<4x768xf32>, vector<4x768xf32>, vector<4x768xf32>, vector<4x768xf32>, vector<4x768xf32>, vector<4x768xf32> -> vector<36x768xf32>
    %15 = arith.truncf %14 : vector<36x768xf32> to vector<36x768xbf16>
    %c0_8 = arith.constant 0 : index
    %c0_9 = arith.constant 0 : index
    %16 = vector.load %arg2[%c0_8, %c0_9] : memref<4x36xbf16, #tpu.memory_space<vmem>>, vector<4x36xbf16>
    %cst = arith.constant dense<0.000000e+00> : vector<4x768xf32>
    %17 = tpu.matmul %16, %15, %cst {dimension_numbers = #tpu.dot_dimension_numbers<[1], [0], [0], [1], [0, 0, 1, 1], [], []>} : vector<4x36xbf16>, vector<36x768xbf16>, vector<4x768xf32> -> vector<4x768xf32>
    %18 = vector.broadcast %1 : vector<1x768xf32> to vector<4x768xf32>
    %19 = arith.mulf %17, %18 : vector<4x768xf32>
    %cst_10 = arith.constant dense<0.000000e+00> : vector<4xf32>
    %20 = vector.multi_reduction <add>, %19, %cst_10 [1] : vector<4x768xf32> to vector<4xf32>
    %21 = vector.shape_cast %20 : vector<4xf32> to vector<4x1xf32>
    %cst_11 = arith.constant 0.001953125 : f32
    %22 = vector.broadcast %cst_11 : f32 to vector<4x1xf32>
    %23 = arith.mulf %21, %22 : vector<4x1xf32>
    %24 = vector.broadcast %23 : vector<4x1xf32> to vector<4x768xf32>
    %25 = arith.subf %17, %24 : vector<4x768xf32>
    %26 = vector.broadcast %1 : vector<1x768xf32> to vector<4x768xf32>
    %27 = arith.mulf %25, %26 : vector<4x768xf32>
    %28 = arith.mulf %27, %27 : vector<4x768xf32>
    %cst_12 = arith.constant dense<0.000000e+00> : vector<4xf32>
    %29 = vector.multi_reduction <add>, %28, %cst_12 [1] : vector<4x768xf32> to vector<4xf32>
    %30 = vector.shape_cast %29 : vector<4xf32> to vector<4x1xf32>
    %cst_13 = arith.constant 0.001953125 : f32
    %31 = vector.broadcast %cst_13 : f32 to vector<4x1xf32>
    %32 = arith.mulf %30, %31 : vector<4x1xf32>
    %cst_14 = arith.constant 9.99999974E-6 : f32
    %33 = vector.broadcast %cst_14 : f32 to vector<4x1xf32>
    %34 = arith.addf %32, %33 : vector<4x1xf32>
    %35 = math.rsqrt %34 : vector<4x1xf32>
    %36 = arith.mulf %2, %35 : vector<4x1xf32>
    %37 = vector.broadcast %36 : vector<4x1xf32> to vector<4x768xf32>
    %38 = arith.mulf %25, %37 : vector<4x768xf32>
    %39 = vector.broadcast %3 : vector<4x1xf32> to vector<4x768xf32>
    %40 = arith.addf %38, %39 : vector<4x768xf32>
    %cst_15 = arith.constant 0.000000e+00 : f32
    %41 = vector.broadcast %cst_15 : f32 to vector<4x768xf32>
    %42 = arith.maximumf %40, %41 : vector<4x768xf32>
    %43 = vector.broadcast %1 : vector<1x768xf32> to vector<4x768xf32>
    %44 = arith.mulf %42, %43 : vector<4x768xf32>
    %c19_i32_16 = arith.constant 19 : i32
    %45 = tpu.dynamic_rotate %44 by %c19_i32_16 dim 1 : vector<4x768xf32>, i32 -> vector<4x768xf32>
    %c18_i32_17 = arith.constant 18 : i32
    %46 = tpu.dynamic_rotate %44 by %c18_i32_17 dim 1 : vector<4x768xf32>, i32 -> vector<4x768xf32>
    %c17_i32_18 = arith.constant 17 : i32
    %47 = tpu.dynamic_rotate %44 by %c17_i32_18 dim 1 : vector<4x768xf32>, i32 -> vector<4x768xf32>
    %c1_i32_19 = arith.constant 1 : i32
    %48 = tpu.dynamic_rotate %44 by %c1_i32_19 dim 1 : vector<4x768xf32>, i32 -> vector<4x768xf32>
    %c767_i32_20 = arith.constant 767 : i32
    %49 = tpu.dynamic_rotate %44 by %c767_i32_20 dim 1 : vector<4x768xf32>, i32 -> vector<4x768xf32>
    %c751_i32_21 = arith.constant 751 : i32
    %50 = tpu.dynamic_rotate %44 by %c751_i32_21 dim 1 : vector<4x768xf32>, i32 -> vector<4x768xf32>
    %c750_i32_22 = arith.constant 750 : i32
    %51 = tpu.dynamic_rotate %44 by %c750_i32_22 dim 1 : vector<4x768xf32>, i32 -> vector<4x768xf32>
    %c749_i32_23 = arith.constant 749 : i32
    %52 = tpu.dynamic_rotate %44 by %c749_i32_23 dim 1 : vector<4x768xf32>, i32 -> vector<4x768xf32>
    %53 = tpu.concatenate %45, %46, %47, %48, %44, %49, %50, %51, %52, %0 in 0 : vector<4x768xf32>, vector<4x768xf32>, vector<4x768xf32>, vector<4x768xf32>, vector<4x768xf32>, vector<4x768xf32>, vector<4x768xf32>, vector<4x768xf32>, vector<4x768xf32>, vector<4x768xf32> -> vector<40x768xf32>
    %54 = arith.truncf %53 : vector<40x768xf32> to vector<40x768xbf16>
    %c0_24 = arith.constant 0 : index
    %c0_25 = arith.constant 0 : index
    %55 = vector.load %arg3[%c0_24, %c0_25] : memref<4x40xbf16, #tpu.memory_space<vmem>>, vector<4x40xbf16>
    %cst_26 = arith.constant dense<0.000000e+00> : vector<4x768xf32>
    %56 = tpu.matmul %55, %54, %cst_26 {dimension_numbers = #tpu.dot_dimension_numbers<[1], [0], [0], [1], [0, 0, 1, 1], [], []>} : vector<4x40xbf16>, vector<40x768xbf16>, vector<4x768xf32> -> vector<4x768xf32>
    %57 = vector.broadcast %1 : vector<1x768xf32> to vector<4x768xf32>
    %58 = arith.mulf %56, %57 : vector<4x768xf32>
    %cst_27 = arith.constant dense<0.000000e+00> : vector<4xf32>
    %59 = vector.multi_reduction <add>, %58, %cst_27 [1] : vector<4x768xf32> to vector<4xf32>
    %60 = vector.shape_cast %59 : vector<4xf32> to vector<4x1xf32>
    %cst_28 = arith.constant 0.001953125 : f32
    %61 = vector.broadcast %cst_28 : f32 to vector<4x1xf32>
    %62 = arith.mulf %60, %61 : vector<4x1xf32>
    %63 = vector.broadcast %62 : vector<4x1xf32> to vector<4x768xf32>
    %64 = arith.subf %56, %63 : vector<4x768xf32>
    %65 = vector.broadcast %1 : vector<1x768xf32> to vector<4x768xf32>
    %66 = arith.mulf %64, %65 : vector<4x768xf32>
    %67 = arith.mulf %66, %66 : vector<4x768xf32>
    %cst_29 = arith.constant dense<0.000000e+00> : vector<4xf32>
    %68 = vector.multi_reduction <add>, %67, %cst_29 [1] : vector<4x768xf32> to vector<4xf32>
    %69 = vector.shape_cast %68 : vector<4xf32> to vector<4x1xf32>
    %cst_30 = arith.constant 0.001953125 : f32
    %70 = vector.broadcast %cst_30 : f32 to vector<4x1xf32>
    %71 = arith.mulf %69, %70 : vector<4x1xf32>
    %cst_31 = arith.constant 9.99999974E-6 : f32
    %72 = vector.broadcast %cst_31 : f32 to vector<4x1xf32>
    %73 = arith.addf %71, %72 : vector<4x1xf32>
    %74 = math.rsqrt %73 : vector<4x1xf32>
    %75 = arith.mulf %4, %74 : vector<4x1xf32>
    %76 = vector.broadcast %75 : vector<4x1xf32> to vector<4x768xf32>
    %77 = arith.mulf %64, %76 : vector<4x768xf32>
    %78 = vector.broadcast %5 : vector<4x1xf32> to vector<4x768xf32>
    %79 = arith.addf %77, %78 : vector<4x768xf32>
    %cst_32 = arith.constant 0.000000e+00 : f32
    %80 = vector.broadcast %cst_32 : f32 to vector<4x768xf32>
    %81 = arith.maximumf %79, %80 : vector<4x768xf32>
    %c0_33 = arith.constant 0 : index
    %c0_34 = arith.constant 0 : index
    %82 = vector.load %arg5[%c0_33, %c0_34] : memref<4x768xf32, #tpu.memory_space<vmem>>, vector<4x768xf32>
    tpu.vector_store %arg5[%c0_33, %c0_34], %81 {strides = array<i32>} : memref<4x768xf32, #tpu.memory_space<vmem>>, vector<4x768xf32>,
    return
  }
}

</mosaic_0001>

<bundles_post_ra>
// kernel: tpu_custom_call.1
= control target key start
LH: loop header
LB: loop body
LE: loop exit
PB: predicated region body
PF: predicated region fallthrough
CT: control target
= control target key end

     0   :  { %10 = vsyncpa [#allocation3], 0  ;;  %s2254_s0 = inlined_call_operand.hbm [shape: f32[4,768], index: 0, kind: input, shape index: {}]   ;;  %s2255_s1 = inlined_call_operand.vmem [shape: f32[1,768], index: 1, kind: input, shape index: {}]   ;;  %s2256_s2 = inlined_call_operand.vmem [shape: bf16[4,36], index: 2, kind: input, shape index: {}]   ;;  %s2257_s3 = inlined_call_operand.vmem [shape: bf16[4,40], index: 3, kind: input, shape index: {}]   ;;  %s2258_s4 = inlined_call_operand.vmem [shape: f32[16,1], index: 4, kind: input, shape index: {}]   ;;  %s2259_s5 = inlined_call_operand.hbm [shape: f32[4,768], index: 5, kind: output, shape index: {}]  }
   0x1   :  { %11 = vsyncpa [#allocation4], 0  ;;  %s1407_s18 = smov [#allocation2]  }
   0x2   :  { %s18_s19 = sshll.u32 %s1407_s18, 4  ;;  %s19_s19 = int_to_ptr.vmem [resolvable:$true] %s18_s19 }
   0x3   :  { %s1371_s20 = scalar_lea.vmem %s19_s19, 384  ;;  %p1376_p1 = scmp.lt.s32.totalorder %s19_s19, %s19_s19 }
   0x4   :  { %p1372_p0 = scmp.ne.s32.totalorder %s19_s19, %s1371_s20  ;;  %p1377_p2 = scmp.lt.s32.totalorder %s1371_s20, %s1371_s20 }
   0x6   :  { %p1378_p3 = por %p1377_p2, %p1376_p1 }
   0x8   :  { %p1379_p4 = pnand %p1378_p3, %p1372_p0 }
   0xa   :  { %1382 = shalt.err (!%p1379_p4)
}
   0xb   :  { %21 = dma.hbm_to_vmem [thread:$0]  %s2254_s0, 384, %s19_s19, [#allocation3]  }
   0xc   :  { %1403 = dma.done.wait [#allocation3], 384  }
   0xd   :  { %1404 = vsyncadd [#allocation3], 4294966912  ;;  %v1451_v0 = vld [vmem:[#allocation2] sm:$0xff]  ;;  %v1453_v1 = vld [vmem:[#allocation2 + $0x8] sm:$0xff]  ;;  %s1408_s0 = smov 127   ;;  %s1409_s23 = smov 109   ;;  %v63_v14 = vlaneseq }
   0xe   :  { %v1457_v2 = vcombine.high %v1451_v0, %v1451_v0  ;;  %v1461_v3 = vcombine.high %v1453_v1, %v1453_v1  ;;  %s1410_s24 = smov 110   ;;  %v1477_v8 = vld [vmem:[#allocation2 + $0x10] sm:$0xff]  ;;  %s1411_s25 = smov 111   ;;  %v2261_v11 = vmov 0   ;;  %vm325_vm2 = vcmask 1041408  }
   0xf   :  { %v1483_v9 = vcombine.high %v1477_v8, %v1477_v8  ;;  %s1412_s26 = smov 1   ;;  %s1413_s27 = smov 18   ;;  %376 = vmatprep.mubr.bf16.mxu0 %v2261_v11  ;;  %417 = vmatprep.mubr.bf16.mxu1 %v2261_v11  ;;  %v1521_v15 = vand.u32 127, %v63_v14  ;;  %vm277_vm5 = vcmask 1043456   ;;  %vm321_vm10 = vcmask 293888  }
  0x10   :  { %v1149_v4 = vpack.i.bf16 %v1453_v1, %v1457_v2  ;;  %v1139_v5 = vpack.i.bf16 %v1457_v2, %v1451_v0  ;;  %v1144_v6 = vpack.i.bf16 %v1461_v3, %v1453_v1  ;;  %v1164_v7 = vpack.i.bf16 %v1461_v3, %v1451_v0  ;;  %s1414_s28 = smov 17   ;;  %s1415_s29 = smov 19   ;;  %1244 = vset.pattern.permute.xlu0 %v2261_v11 }
  0x11   :  { %v1194_v10 = vpack.i.bf16 %v1453_v1, %v1483_v9  ;;  %1245 = vset.pattern.permute.xlu1 %v2261_v11  ;;  %v1224_v12 = vpack.i.bf16 %v1483_v9, %v1477_v8  ;;  %v1239_v13 = vpack.i.bf16 %v1477_v8, %v1461_v3  ;;  %vm198_vm0 = vcmp.lt.s32.totalorder %v1521_v15, 109 }
  0x12   :  { %1150 = vrot.lane.b32.xlu1 %v1149_v4, %s1408_s0  ;;  %1140 = vrot.lane.b32.xlu0 %v1139_v5, %s1409_s23  ;;  %vm141_vm1 = vcmp.lt.s32.totalorder %v1521_v15, 127  ;;  %vm179_vm3 = vcmp.lt.s32.totalorder %v1521_v15, 110  ;;  %vm160_vm4 = vcmp.lt.s32.totalorder %v1521_v15, 111  ;;  %vm122_vm6 = vcmp.lt.s32.totalorder %v1521_v15, 1 }
  0x13   :  { %vm84_vm7 = vcmp.lt.s32.totalorder %v1521_v15, 18  ;;  %vm103_vm8 = vcmp.lt.s32.totalorder %v1521_v15, 17  ;;  %vm65_vm9 = vcmp.lt.s32.totalorder %v1521_v15, 19  ;;  %vm858_vm11 = vcmask 326656  }
  0x16   :  { %1155 = vrot.lane.b32.xlu1 %v1149_v4, %s1410_s24  ;;  %1145 = vrot.lane.b32.xlu0 %v1144_v6, %s1409_s23 }
  0x1a   :  { %1165 = vrot.lane.b32.xlu1 %v1164_v7, %s1410_s24  ;;  %1160 = vrot.lane.b32.xlu0 %v1164_v7, %s1408_s0 }
  0x1e   :  { %1175 = vrot.lane.b32.xlu1 %v1164_v7, %s1411_s25  ;;  %1170 = vrot.lane.b32.xlu0 %v1149_v4, %s1411_s25 }
  0x22   :  { %1185 = vrot.lane.b32.xlu1 %v1139_v5, %s1412_s26  ;;  %1180 = vrot.lane.b32.xlu0 %v1139_v5, %s1413_s27 }
  0x26   :  { %1195 = vrot.lane.b32.xlu1 %v1194_v10, %s1412_s26  ;;  %1190 = vrot.lane.b32.xlu0 %v1194_v10, %s1413_s27 }
  0x2a   :  { %1205 = vrot.lane.b32.xlu1 %v1139_v5, %s1414_s28  ;;  %1200 = vrot.lane.b32.xlu0 %v1139_v5, %s1415_s29 }
  0x2e   :  { %1215 = vrot.lane.b32.xlu1 %v1194_v10, %s1414_s28  ;;  %1210 = vrot.lane.b32.xlu0 %v1194_v10, %s1415_s29 }
  0x32   :  { %1225 = vrot.lane.b32.xlu1 %v1224_v12, %s1408_s0  ;;  %1220 = vrot.lane.b32.xlu0 %v1224_v12, %s1409_s23 }
  0x36   :  { %1235 = vrot.lane.b32.xlu1 %v1224_v12, %s1411_s25  ;;  %1230 = vrot.lane.b32.xlu0 %v1224_v12, %s1410_s24 }
  0x3a   :  { %116 = vrot.lane.b32.xlu1 %v1461_v3, %s1412_s26  ;;  %1240 = vrot.lane.b32.xlu0 %v1239_v13, %s1413_s27 }
  0x3e   :  { %97 = vrot.lane.b32.xlu1 %v1461_v3, %s1414_s28  ;;  %57 = vrot.lane.b32.xlu0 %v1461_v3, %s1415_s29 }
  0x42   :  { %59 = vrot.lane.b32.xlu1 %v1477_v8, %s1415_s29  ;;  %118 = vrot.lane.b32.xlu0 %v1477_v8, %s1412_s26 }
  0x46   :  { %99 = vrot.lane.b32.xlu0 %v1477_v8, %s1414_s28 }
  0x84   :  { %v1523_v16 = vpop.permute.xlu1 %1150  ;;  %v1525_v17 = vpop.permute.xlu0 %1140 }
  0x85   :  { %v1143_v18 = vunpack.i.h.bf16 %v1525_v17  ;;  %v1142_v19 = vunpack.i.l.bf16 %v1525_v17  ;;  %v1153_v23 = vunpack.i.h.bf16 %v1523_v16  ;;  %v1152_v24 = vunpack.i.l.bf16 %v1523_v16 }
  0x87   :  { %v203_v20 = vsel %vm198_vm0, %v1142_v19, %v1143_v18  ;;  %v145_v33 = vsel %vm141_vm1, %v1152_v24, %v1153_v23 }
  0x88   :  { %v1156_v21 = vpop.permute.xlu1 %1155  ;;  %v1534_v22 = vpop.permute.xlu0 %1145  ;;  %v314_v26 = vpack.c.bf16 %v203_v20, %v203_v20  ;;  %v248_v40 = vrot.slane %v145_v33, 4 }
  0x89   :  { %v1147_v25 = vunpack.i.l.bf16 %v1534_v22  ;;  %v1158_v27 = vunpack.i.h.bf16 %v1156_v21  ;;  %v1157_v28 = vunpack.i.l.bf16 %v1156_v21  ;;  %v1148_v5 = vunpack.i.h.bf16 %v1534_v22 }
  0x8a   :  { %v327_v36 = vsel %vm325_vm2, %v314_v26, 0  ;;  %v291_v57 = vsel %vm277_vm5, %v1457_v2, %v248_v40 }
  0x8b   :  { %v202_v29 = vsel %vm198_vm0, %v1143_v18, %v1147_v25  ;;  %v183_v37 = vsel %vm179_vm3, %v1157_v28, %v1158_v27 }
  0x8c   :  { %v1545_v30 = vpop.permute.xlu1 %1165  ;;  %v1547_v31 = vpop.permute.xlu0 %1160  ;;  %v315_v32 = vpack.c.bf16 %v202_v29, %v202_v29  ;;  %v266_v47 = vrot.slane %v183_v37, 4 }
  0x8d   :  { %v1167_v34 = vunpack.i.l.bf16 %v1545_v30  ;;  %v1162_v35 = vunpack.i.l.bf16 %v1547_v31  ;;  %v1168_v55 = vunpack.i.h.bf16 %v1545_v30  ;;  %v1163_v56 = vunpack.i.h.bf16 %v1547_v31  ;;  %v1697_v31 = vld [vmem:[%s2256_s2] sm:$0x3] }
  0x8e   :  { %1116 = vmatprep.subr.msk.bf16.mxu0 %vm325_vm2, %v315_v32 }
  0x8f   :  { %v184_v38 = vsel %vm179_vm3, %v1167_v34, %v1157_v28  ;;  %v146_v39 = vsel %vm141_vm1, %v1162_v35, %v1152_v24  ;;  %355 = vmatpush1.bf16.msra.mxu0 %v327_v36  ;;  %v182_v10 = vsel %vm179_vm3, %v1158_v27, %v1168_v55  ;;  %v144_v12 = vsel %vm141_vm1, %v1153_v23, %v1163_v56 }
  0x90   :  { %v1565_v41 = vpop.permute.xlu1 %1175  ;;  %v1171_v42 = vpop.permute.xlu0 %1170  ;;  %v247_v43 = vrot.slane %v146_v39, 4  ;;  %v265_v48 = vrot.slane %v184_v38, 4  ;;  %v267_v21 = vrot.slane %v182_v10, 4  ;;  %v249_v24 = vrot.slane %v144_v12, 4 }
  0x91   :  { %v1177_v44 = vunpack.i.l.bf16 %v1565_v41  ;;  %v1173_v45 = vunpack.i.h.bf16 %v1171_v42  ;;  %v1172_v46 = vunpack.i.l.bf16 %v1171_v42  ;;  %v1178_v6 = vunpack.i.h.bf16 %v1565_v41 }
  0x92   :  { %v290_v58 = vsel %vm277_vm5, %v1451_v0, %v247_v43  ;;  %v201_v28 = vsel %vm198_vm0, %v1147_v25, %v1148_v5 }
  0x93   :  { %v164_v49 = vsel %vm160_vm4, %v1172_v46, %v1173_v45  ;;  %v165_v50 = vsel %vm160_vm4, %v1177_v44, %v1172_v46  ;;  %v163_v23 = vsel %vm160_vm4, %v1173_v45, %v1178_v6 }
  0x94   :  { %v1186_v51 = vpop.permute.xlu1 %1185  ;;  %v1575_v52 = vpop.permute.xlu0 %1180  ;;  %v297_v53 = vsel %vm277_vm5, %v164_v49, %v266_v47  ;;  %v296_v54 = vsel %vm277_vm5, %v165_v50, %v265_v48  ;;  %v316_v50 = vpack.c.bf16 %v201_v28, %v201_v28 }
  0x95   :  { %v309_v59 = vpack.c.bf16 %v297_v53, %v291_v57  ;;  %v308_v60 = vpack.c.bf16 %v296_v54, %v290_v58  ;;  %v1188_v61 = vunpack.i.h.bf16 %v1186_v51  ;;  %v1187_v62 = vunpack.i.l.bf16 %v1186_v51 }
  0x96   :  { %v1183_v63 = vunpack.i.h.bf16 %v1575_v52  ;;  %v1182_v4 = vunpack.i.l.bf16 %v1575_v52  ;;  %v1645_v53 = vsel %vm277_vm5, %v1453_v1, %v249_v24  ;;  %v1648_v54 = vsel %vm277_vm5, %v163_v23, %v267_v21 }
  0x97   :  { %356 = vmatprep.subr.bf16.mxu0 %v309_v59  ;;  %v127_v13 = vsel %vm122_vm6, %v1187_v62, %v1188_v61  ;;  %v310_v24 = vpack.c.bf16 %v1648_v54, %v1645_v53 }
  0x98   :  { %v1591_v2 = vpop.permute.xlu1 %1195  ;;  %v1593_v7 = vpop.permute.xlu0 %1190  ;;  %357 = vmatpush1.bf16.msra.mxu0 %v308_v60  ;;  %v89_v16 = vsel %vm84_vm7, %v1182_v4, %v1183_v63  ;;  %v230_v37 = vrot.slane %v127_v13, 4 }
  0x99   :  { %v1197_v18 = vunpack.i.l.bf16 %v1591_v2  ;;  %v1192_v20 = vunpack.i.l.bf16 %v1593_v7  ;;  %v212_v38 = vrot.slane %v89_v16, 4  ;;  %v1198_v39 = vunpack.i.h.bf16 %v1591_v2 }
  0x9a   :  { %v1193_v40 = vunpack.i.h.bf16 %v1593_v7 }
  0x9b   :  { %v128_v42 = vsel %vm122_vm6, %v1197_v18, %v1187_v62  ;;  %v90_v25 = vsel %vm84_vm7, %v1192_v20, %v1182_v4  ;;  %v1654_v57 = vsel %vm122_vm6, %v1188_v61, %v1198_v39 }
  0x9c   :  { %v1206_v26 = vpop.permute.xlu1 %1205  ;;  %v1201_v27 = vpop.permute.xlu0 %1200  ;;  %v229_v58 = vrot.slane %v128_v42, 4  ;;  %v211_v59 = vrot.slane %v90_v25, 4  ;;  %v88_v62 = vsel %vm84_vm7, %v1183_v63, %v1193_v40  ;;  %v333_v63 = vsel %vm325_vm2, %v316_v50, 0 }
  0x9d   :  { %v1208_v29 = vunpack.i.h.bf16 %v1206_v26  ;;  %v1207_v32 = vunpack.i.l.bf16 %v1206_v26  ;;  %v1203_v33 = vunpack.i.h.bf16 %v1201_v27  ;;  %v1202_v36 = vunpack.i.l.bf16 %v1201_v27 }
  0x9f   :  { %v108_v43 = vsel %vm103_vm8, %v1207_v32, %v1208_v29  ;;  %v70_v45 = vsel %vm65_vm9, %v1202_v36, %v1203_v33 }
  0xa0   :  { %v1635_v46 = vpop.permute.xlu1 %1215  ;;  %v1637_v47 = vpop.permute.xlu0 %1210  ;;  %v279_v48 = vsel %vm277_vm5, %v70_v45, %v212_v38  ;;  %v285_v49 = vsel %vm277_vm5, %v108_v43, %v230_v37 }
  0xa1   :  { %v1217_v51 = vunpack.i.l.bf16 %v1635_v46  ;;  %v1212_v52 = vunpack.i.l.bf16 %v1637_v47  ;;  %v303_v60 = vpack.c.bf16 %v285_v49, %v279_v48  ;;  %v1213_v10 = vunpack.i.h.bf16 %v1637_v47 }
  0xa2   :  { %v1218_v23 = vunpack.i.h.bf16 %v1635_v46  ;;  %v469_v46 = vshrl.u32 %v63_v14, 7 }
  0xa3   :  { %v109_v4 = vsel %vm103_vm8, %v1217_v51, %v1207_v32  ;;  %v71_v61 = vsel %vm65_vm9, %v1212_v52, %v1202_v36  ;;  %358 = vmatprep.subr.bf16.mxu0 %v303_v60  ;;  %v231_v32 = vrot.slane %v1654_v57, 4  ;;  %v213_v36 = vrot.slane %v88_v62, 4 }
  0xa4   :  { %v1226_v12 = vpop.permute.xlu1 %1225  ;;  %v1221_v13 = vpop.permute.xlu0 %1220  ;;  %v278_v16 = vsel %vm277_vm5, %v71_v61, %v211_v59  ;;  %v284_v21 = vsel %vm277_vm5, %v109_v4, %v229_v58  ;;  %v69_v42 = vsel %vm65_vm9, %v1203_v33, %v1213_v10  ;;  %v107_v17 = vsel %vm103_vm8, %v1208_v29, %v1218_v23 }
  0xa5   :  { %v1228_v26 = vunpack.i.h.bf16 %v1226_v12  ;;  %v1227_v27 = vunpack.i.l.bf16 %v1226_v12  ;;  %v1223_v28 = vunpack.i.h.bf16 %v1221_v13  ;;  %v1222_v37 = vunpack.i.l.bf16 %v1221_v13 }
  0xa6   :  { %v302_v38 = vpack.c.bf16 %v284_v21, %v278_v16  ;;  %v280_v61 = vsel %vm277_vm5, %v69_v42, %v213_v36  ;;  %v482_v14 = vsub.s32 3, %v469_v46 }
  0xa7   :  { %v143_v25 = vsel %vm141_vm1, %v1163_v56, %v1227_v27  ;;  %v147_v43 = vsel %vm141_vm1, %v1228_v26, %v1162_v35  ;;  %v204_v45 = vsel %vm198_vm0, %v1223_v28, %v1142_v19  ;;  %v142_v48 = vsel %vm141_vm1, %v1227_v27, %v1228_v26 }
  0xa8   :  { %v250_v49 = vrot.slane %v143_v25, 4  ;;  %v252_v33 = vrot.slane %v147_v43, 4  ;;  %v319_v50 = vpack.c.bf16 %v204_v45, %v204_v45  ;;  %359 = vmatpush1.bf16.msra.mxu0 %v302_v38  ;;  %v1236_v58 = vpop.permute.xlu1 %1235  ;;  %v1231_v59 = vpop.permute.xlu0 %1230  ;;  %v200_v62 = vsel %vm198_vm0, %v1148_v5, %v1222_v37 }
  0xa9   :  { %v1238_v19 = vunpack.i.h.bf16 %v1236_v58  ;;  %v1233_v35 = vunpack.i.h.bf16 %v1231_v59  ;;  %v1232_v56 = vunpack.i.l.bf16 %v1231_v59  ;;  %v1237_v60 = vunpack.i.l.bf16 %v1236_v58 }
  0xaa   :  { %1120 = vmatprep.subr.msk.bf16.mxu0 %vm325_vm2, %v319_v50  ;;  %v199_v4 = vsel %vm198_vm0, %v1222_v37, %v1223_v28  ;;  %v251_v12 = vrot.slane %v142_v48, 4  ;;  %v293_v22 = vsel %vm277_vm5, %v1461_v3, %v250_v49  ;;  %v295_v5 = vsel %vm277_vm5, %v1483_v9, %v252_v33 }
  0xab   :  { %v185_v29 = vsel %vm179_vm3, %v1233_v35, %v1167_v34  ;;  %1117 = vmatmul.mubr.msk.bf16.vlgmr.msra.gmra.mxu0 %vm321_vm10, %v1697_v31  ;;  %v180_v16 = vsel %vm179_vm3, %v1232_v56, %v1233_v35  ;;  %v181_v21 = vsel %vm179_vm3, %v1168_v55, %v1232_v56  ;;  %v317_v26 = vpack.c.bf16 %v200_v62, %v200_v62 }
  0xac   :  { %v270_v13 = vrot.slane %v185_v29, 4  ;;  %v117_v34 = vpop.permute.xlu1 %116  ;;  %v1241_v27 = vpop.permute.xlu0 %1240  ;;  %458 = vmatprep.mubr.bf16.mxu0 %v2261_v11  ;;  %v166_v3 = vsel %vm160_vm4, %v1238_v19, %v1177_v44  ;;  %v268_v9 = vrot.slane %v181_v21, 4  ;;  %v318_v28 = vpack.c.bf16 %v199_v4, %v199_v4 }
  0xad   :  { %v125_v30 = vsel %vm122_vm6, %v1198_v39, %v117_v34  ;;  %v162_v55 = vsel %vm160_vm4, %v1178_v6, %v1237_v60  ;;  %v269_v36 = vrot.slane %v180_v16, 4  ;;  %1118 = vmatprep.subr.msk.bf16.mxu1 %vm325_vm2, %v317_v26  ;;  %v1242_v37 = vunpack.i.l.bf16 %v1241_v27  ;;  %v37_v26 = vld [vmem:[%s2255_s1] sm:$0x3f] }
  0xae   :  { %v301_v38 = vsel %vm277_vm5, %v166_v3, %v270_v13  ;;  %v161_v44 = vsel %vm160_vm4, %v1237_v60, %v1238_v19  ;;  %396 = vmatpush1.bf16.msra.mxu1 %v333_v63  ;;  %v339_v42 = vsel %vm325_vm2, %v318_v28, 0  ;;  %v299_v25 = vsel %vm277_vm5, %v162_v55, %v268_v9 }
  0xaf   :  { %v313_v39 = vpack.c.bf16 %v301_v38, %v295_v5  ;;  %437 = vmatpush1.bf16.msra.mxu0 %v339_v42  ;;  %v232_v41 = vrot.slane %v125_v30, 4  ;;  %v87_v6 = vsel %vm84_vm7, %v1193_v40, %v1242_v37  ;;  %v311_v48 = vpack.c.bf16 %v299_v25, %v293_v22 }
  0xb0   :  { %v98_v43 = vpop.permute.xlu1 %97  ;;  %v58_v45 = vpop.permute.xlu0 %57  ;;  %v294_v49 = vsel %vm277_vm5, %v1477_v8, %v251_v12  ;;  %v1243_v33 = vunpack.i.h.bf16 %v1241_v27  ;;  %v214_v63 = vrot.slane %v87_v6, 4  ;;  %v286_v58 = vsel %vm277_vm5, %v107_v17, %v231_v32 }
  0xb1   :  { %v106_v50 = vsel %vm103_vm8, %v1218_v23, %v98_v43  ;;  %438 = vmatprep.subr.bf16.mxu0 %v313_v39  ;;  %v68_v59 = vsel %vm65_vm9, %v1213_v10, %v58_v45  ;;  %397 = vmatprep.subr.bf16.mxu1 %v311_v48  ;;  %v300_v19 = vsel %vm277_vm5, %v161_v44, %v269_v36  ;;  %v470_v16 = vsub.s32 0, %v469_v46 }
  0xb2   :  { %v287_v40 = vsel %vm277_vm5, %v106_v50, %v232_v41  ;;  %v281_v35 = vsel %vm277_vm5, %v68_v59, %v214_v63  ;;  %398 = vmatpush1.bf16.msra.mxu1 %v310_v24  ;;  %v312_v23 = vpack.c.bf16 %v300_v19, %v294_v49  ;;  %v304_v17 = vpack.c.bf16 %v286_v58, %v280_v61 }
  0xb3   :  { %v305_v32 = vpack.c.bf16 %v287_v40, %v281_v35  ;;  %v85_v60 = vsel %vm84_vm7, %v1243_v33, %v1192_v20  ;;  %v86_v10 = vsel %vm84_vm7, %v1242_v37, %v1243_v33  ;;  %v474_v21 = vsub.s32 1, %v469_v46 }
  0xb4   :  { %v60_v57 = vpop.permute.xlu1 %59  ;;  %v119_v56 = vpop.permute.xlu0 %118  ;;  %439 = vmatpush1.bf16.msra.mxu0 %v312_v23  ;;  %v215_v24 = vrot.slane %v86_v10, 4  ;;  %v216_v62 = vrot.slane %v85_v60, 4  ;;  %v1807_v3 = vrot.slane %v37_v26, %v470_v16  ;;  %v478_v30 = vsub.s32 2, %v469_v46 }
  0xb5   :  { %v123_v53 = vsel %vm122_vm6, %v119_v56, %v1197_v18  ;;  %v124_v54 = vsel %vm122_vm6, %v117_v34, %v119_v56  ;;  %399 = vmatprep.subr.bf16.mxu1 %v305_v32  ;;  %v66_v7 = vsel %vm65_vm9, %v60_v57, %v1212_v52  ;;  %v67_v20 = vsel %vm65_vm9, %v58_v45, %v60_v57 }
  0xb6   :  { %400 = vmatpush1.bf16.msra.mxu1 %v304_v17  ;;  %v233_v4 = vrot.slane %v124_v54, 4  ;;  %v234_v2 = vrot.slane %v123_v53, 4  ;;  %v282_v12 = vsel %vm277_vm5, %v67_v20, %v215_v24  ;;  %v283_v52 = vsel %vm277_vm5, %v66_v7, %v216_v62 }
  0xb7   :  { %v1809_v9 = vrot.slane %v37_v26, %v474_v21  ;;  %v1813_v36 = vrot.slane %v37_v26, %v478_v30  ;;  %v1817_v44 = vrot.slane %v37_v26, %v482_v14  ;;  %v486_v25 = vsub.s32 4, %v469_v46 }
  0xb8   :  { %v100_v61 = vpop.permute.xlu0 %99 }
  0xb9   :  { %v104_v18 = vsel %vm103_vm8, %v100_v61, %v1217_v51  ;;  %v105_v47 = vsel %vm103_vm8, %v98_v43, %v100_v61  ;;  %1119 = vmatmul.mubr.msk.bf16.vlgmr.msra.gmra.mxu1 %vm321_vm10, %v1697_v31  ;;  %v490_v43 = vsub.s32 5, %v469_v46  ;;  %v1822_v33 = vrot.slane %v37_v26, %v486_v25  ;;  %v39_v25 = vld [vmem:[%s2258_s4 + $0x4] sm:$0xf] }
  0xba   :  { %v288_v29 = vsel %vm277_vm5, %v105_v47, %v233_v4  ;;  %v289_v22 = vsel %vm277_vm5, %v104_v18, %v234_v2  ;;  %912 = vmatprep.mubr.bf16.mxu1 %v2261_v11 }
  0xbb   :  { %v306_v5 = vpack.c.bf16 %v288_v29, %v282_v12  ;;  %v307_v13 = vpack.c.bf16 %v289_v22, %v283_v52  ;;  %v1825_v40 = vrot.slane %v37_v26, %v490_v43  ;;  %v38_v43 = vld [vmem:[%s2258_s4] sm:$0xf] }
  0xbd   :  { %440 = vmatprep.subr.bf16.mxu0 %v307_v13 }
  0xbe   :  { %441 = vmatpush1.bf16.msra.mxu0 %v306_v5 }
  0xc1   :  { %1121 = vmatmul.mubr.msk.bf16.vlgmr.msra.gmra.mxu0 %vm321_vm10, %v1697_v31 }
  0xc2   :  { %953 = vmatprep.mubr.bf16.mxu0 %v2261_v11 }
 0x16b   :  { %v378_v51 = vpop.f32.mrf.mxu0 }
 0x16c   :  { %v498_v31 = vmul.f32 %v1807_v3, %v378_v51 }
 0x16d   :  { %v380_v34 = vpop.f32.mrf.mxu0 }
 0x16e   :  { %v499_v55 = vmul.f32 %v1809_v9, %v380_v34  ;;  %v504_v37 = vsel %vm277_vm5, %v498_v31, 0.0 }
 0x16f   :  { %v382_v27 = vpop.f32.mrf.mxu0 }
 0x170   :  { %v505_v38 = vsel %vm277_vm5, %v499_v55, 0.0 }
 0x171   :  { %v383_v28 = vpop.f32.mrf.mxu0  ;;  %v506_v39 = vadd.f32 %v505_v38, %v504_v37 }
 0x179   :  { %v419_v42 = vpop.f32.mrf.mxu1 }
 0x17a   :  { %v500_v41 = vmul.f32 %v1813_v36, %v419_v42 }
 0x17b   :  { %v421_v6 = vpop.f32.mrf.mxu1 }
 0x17c   :  { %v507_v45 = vsel %vm277_vm5, %v500_v41, 0.0  ;;  %v501_v48 = vmul.f32 %v1817_v44, %v421_v6 }
 0x17d   :  { %v423_v49 = vpop.f32.mrf.mxu1  ;;  %v508_v63 = vadd.f32 %v507_v45, %v506_v39 }
 0x17e   :  { %v509_v50 = vsel %vm277_vm5, %v501_v48, 0.0 }
 0x17f   :  { %v424_v58 = vpop.f32.mrf.mxu1  ;;  %v510_v35 = vadd.f32 %v509_v50, %v508_v63 }
 0x181   :  { %v460_v59 = vpop.f32.mrf.mxu0 }
 0x182   :  { %v502_v19 = vmul.f32 %v1822_v33, %v460_v59 }
 0x183   :  { %v462_v23 = vpop.f32.mrf.mxu0 }
 0x184   :  { %v511_v57 = vsel %vm277_vm5, %v502_v19, 0.0  ;;  %v503_v56 = vmul.f32 %v1825_v40, %v462_v23 }
 0x185   :  { %v464_v32 = vpop.f32.mrf.mxu0  ;;  %v512_v17 = vadd.f32 %v511_v57, %v510_v35 }
 0x186   :  { %v513_v60 = vsel %vm277_vm5, %v503_v56, 0.0 }
 0x187   :  { %v465_v10 = vpop.f32.mrf.mxu0  ;;  %v514_v53 = vadd.f32 %v513_v60, %v512_v17 }
 0x189   :  { %515 = vadd.xlane.f32.xlu1 %v514_v53 }
 0x19a   :  { %566 = vperm.xlu1 %1245, %v39_v25  }
 0x212   :  { %v516_v54 = vpop.xlane.xlu1 %515 }
 0x213   :  { %v517_v7 = vmul.f32 0.001953125, %v516_v54 }
 0x215   :  { %v518_v20 = vsub.f32 %v378_v51, %v517_v7  ;;  %v519_v24 = vsub.f32 %v380_v34, %v517_v7  ;;  %v520_v62 = vsub.f32 %v419_v42, %v517_v7  ;;  %v521_v4 = vsub.f32 %v421_v6, %v517_v7 }
 0x216   :  { %v522_v2 = vsub.f32 %v460_v59, %v517_v7  ;;  %v523_v61 = vsub.f32 %v462_v23, %v517_v7  ;;  %v567_v63 = vpop.permute.xlu1 %566 }
 0x217   :  { %v524_v18 = vmul.f32 %v518_v20, %v1807_v3  ;;  %v525_v47 = vmul.f32 %v519_v24, %v1809_v9  ;;  %v526_v12 = vmul.f32 %v520_v62, %v1813_v36  ;;  %v527_v52 = vmul.f32 %v521_v4, %v1817_v44 }
 0x218   :  { %v528_v29 = vmul.f32 %v522_v2, %v1822_v33  ;;  %v529_v46 = vmul.f32 %v523_v61, %v1825_v40 }
 0x219   :  { %v530_v22 = vmul.f32 %v524_v18, %v524_v18  ;;  %v531_v5 = vmul.f32 %v525_v47, %v525_v47  ;;  %v532_v13 = vmul.f32 %v526_v12, %v526_v12  ;;  %v533_v51 = vmul.f32 %v527_v52, %v527_v52 }
 0x21a   :  { %v534_v34 = vmul.f32 %v528_v29, %v528_v29  ;;  %v535_v30 = vmul.f32 %v529_v46, %v529_v46 }
 0x21b   :  { %v536_v16 = vsel %vm277_vm5, %v530_v22, 0.0  ;;  %v537_v21 = vsel %vm277_vm5, %v531_v5, 0.0  ;;  %v539_v27 = vsel %vm277_vm5, %v532_v13, 0.0  ;;  %v541_v31 = vsel %vm277_vm5, %v533_v51, 0.0 }
 0x21c   :  { %v538_v26 = vadd.f32 %v537_v21, %v536_v16  ;;  %v543_v14 = vsel %vm277_vm5, %v534_v34, 0.0  ;;  %v545_v38 = vsel %vm277_vm5, %v535_v30, 0.0  ;;  %v803_v34 = vcombine.low %v1451_v0, %v1451_v0 }
 0x21e   :  { %v540_v28 = vadd.f32 %v539_v27, %v538_v26 }
 0x220   :  { %v542_v55 = vadd.f32 %v541_v31, %v540_v28 }
 0x222   :  { %v544_v37 = vadd.f32 %v543_v14, %v542_v55 }
 0x224   :  { %v546_v42 = vadd.f32 %v545_v38, %v544_v37 }
 0x226   :  { %547 = vadd.xlane.f32.xlu0 %v546_v42 }
 0x2af   :  { %v548_v39 = vpop.xlane.xlu0 %547 }
 0x2b0   :  { %v549_v41 = vmul.f32 0.001953125, %v548_v39 }
 0x2b2   :  { %v550_v6 = vadd.f32 1e-05, %v549_v41 }
 0x2b4   :  { %1357 = vrsqrt.f32 %v550_v6 }
 0x2c1   :  { %v1358_v45 = vpop.eup %1357 }
 0x2c2   :  { %v552_v48 = vmul.f32 %v1358_v45, %v38_v43 }
 0x2c4   :  { %555 = vperm.xlu0 %1244, %v552_v48  }
 0x33f   :  { %v556_v49 = vpop.permute.xlu0 %555 }
 0x340   :  { %v558_v50 = vmul.f32 %v556_v49, %v518_v20  ;;  %v559_v58 = vmul.f32 %v556_v49, %v519_v24  ;;  %v560_v59 = vmul.f32 %v556_v49, %v520_v62  ;;  %v561_v19 = vmul.f32 %v556_v49, %v521_v4 }
 0x341   :  { %v563_v35 = vmul.f32 %v556_v49, %v523_v61  ;;  %v562_v47 = vmul.f32 %v556_v49, %v522_v2 }
 0x342   :  { %v569_v23 = vadd.f32 %v567_v63, %v558_v50  ;;  %v570_v57 = vadd.f32 %v567_v63, %v559_v58  ;;  %v571_v56 = vadd.f32 %v567_v63, %v560_v59  ;;  %v572_v32 = vadd.f32 %v567_v63, %v561_v19 }
 0x343   :  { %v574_v17 = vadd.f32 %v567_v63, %v563_v35  ;;  %v573_v29 = vadd.f32 %v567_v63, %v562_v47 }
 0x344   :  { %v575_v60 = vmax.f32 %v569_v23, 0.0  ;;  %v576_v10 = vmax.f32 %v570_v57, 0.0  ;;  %v577_v53 = vmax.f32 %v571_v56, 0.0  ;;  %v578_v54 = vmax.f32 %v572_v32, 0.0 }
 0x345   :  { %v580_v24 = vmax.f32 %v574_v17, 0.0  ;;  %v579_v2 = vmax.f32 %v573_v29, 0.0 }
 0x346   :  { %v1850_v7 = vmul.f32 %v575_v60, %v1807_v3  ;;  %v1853_v18 = vmul.f32 %v576_v10, %v1809_v9  ;;  %v1856_v20 = vmul.f32 %v578_v54, %v1817_v44  ;;  %v1859_v62 = vmul.f32 %v577_v53, %v1813_v36 }
 0x347   :  { %v1868_v12 = vmul.f32 %v580_v24, %v1825_v40  ;;  %v1883_v13 = vmul.f32 %v579_v2, %v1822_v33  ;;  %v804_v53 = vcombine.low %v1453_v1, %v1453_v1 }
 0x348   :  { %v1281_v4 = vpack.i.bf16 %v1856_v20, %v1850_v7  ;;  %v1246_v61 = vpack.i.bf16 %v1853_v18, %v1850_v7  ;;  %v1251_v52 = vpack.i.bf16 %v1856_v20, %v1859_v62  ;;  %v1256_v5 = vpack.i.bf16 %v1859_v62, %v1853_v18 }
 0x349   :  { %v1301_v22 = vpack.i.bf16 %v1859_v62, %v1868_v12  ;;  %v1331_v46 = vpack.i.bf16 %v1868_v12, %v1883_v13  ;;  %v1346_v51 = vpack.i.bf16 %v1883_v13, %v1856_v20 }
 0x34a   :  { %1282 = vrot.lane.b32.xlu0 %v1281_v4, %s1411_s25  ;;  %1247 = vrot.lane.b32.xlu1 %v1246_v61, %s1409_s23 }
 0x34e   :  { %1292 = vrot.lane.b32.xlu0 %v1246_v61, %s1412_s26  ;;  %1252 = vrot.lane.b32.xlu1 %v1251_v52, %s1409_s23 }
 0x352   :  { %1302 = vrot.lane.b32.xlu0 %v1301_v22, %s1412_s26  ;;  %1257 = vrot.lane.b32.xlu1 %v1256_v5, %s1408_s0 }
 0x356   :  { %1312 = vrot.lane.b32.xlu0 %v1246_v61, %s1414_s28  ;;  %1262 = vrot.lane.b32.xlu1 %v1256_v5, %s1410_s24 }
 0x35a   :  { %1322 = vrot.lane.b32.xlu0 %v1301_v22, %s1415_s29  ;;  %1267 = vrot.lane.b32.xlu1 %v1281_v4, %s1408_s0 }
 0x35e   :  { %1332 = vrot.lane.b32.xlu0 %v1331_v46, %s1408_s0  ;;  %1272 = vrot.lane.b32.xlu1 %v1281_v4, %s1410_s24 }
 0x362   :  { %1342 = vrot.lane.b32.xlu0 %v1331_v46, %s1411_s25  ;;  %1277 = vrot.lane.b32.xlu1 %v1256_v5, %s1411_s25 }
 0x366   :  { %647 = vrot.lane.b32.xlu0 %v1856_v20, %s1412_s26  ;;  %1287 = vrot.lane.b32.xlu1 %v1246_v61, %s1413_s27 }
 0x36a   :  { %629 = vrot.lane.b32.xlu0 %v1856_v20, %s1414_s28  ;;  %1297 = vrot.lane.b32.xlu1 %v1301_v22, %s1413_s27 }
 0x36e   :  { %595 = vrot.lane.b32.xlu0 %v1883_v13, %s1415_s29  ;;  %1307 = vrot.lane.b32.xlu1 %v1246_v61, %s1415_s29 }
 0x372   :  { %1317 = vrot.lane.b32.xlu1 %v1331_v46, %s1409_s23 }
 0x376   :  { %1327 = vrot.lane.b32.xlu1 %v1301_v22, %s1414_s28 }
 0x37a   :  { %1337 = vrot.lane.b32.xlu1 %v1331_v46, %s1410_s24 }
 0x37e   :  { %1347 = vrot.lane.b32.xlu1 %v1346_v51, %s1413_s27 }
 0x382   :  { %593 = vrot.lane.b32.xlu1 %v1856_v20, %s1415_s29 }
 0x386   :  { %649 = vrot.lane.b32.xlu1 %v1883_v13, %s1412_s26 }
 0x38a   :  { %631 = vrot.lane.b32.xlu1 %v1883_v13, %s1414_s28 }
 0x3bc   :  { %v1914_v16 = vpop.permute.xlu1 %1247  ;;  %v1920_v27 = vpop.permute.xlu0 %1282 }
 0x3bd   :  { %v1250_v21 = vunpack.i.h.bf16 %v1914_v16  ;;  %v1249_v26 = vunpack.i.l.bf16 %v1914_v16  ;;  %v1284_v17 = vunpack.i.l.bf16 %v1920_v27 }
 0x3bf   :  { %v729_v28 = vsel %vm198_vm0, %v1249_v26, %v1250_v21 }
 0x3c0   :  { %v1926_v30 = vpop.permute.xlu1 %1252  ;;  %v833_v55 = vsel %vm277_vm5, %v729_v28, %v803_v34  ;;  %v1293_v37 = vpop.permute.xlu0 %1292 }
 0x3c1   :  { %v1254_v31 = vunpack.i.l.bf16 %v1926_v30  ;;  %v851_v25 = vpack.c.bf16 %v833_v55, %v833_v55  ;;  %v1255_v35 = vunpack.i.h.bf16 %v1926_v30  ;;  %v1295_v52 = vunpack.i.h.bf16 %v1293_v37  ;;  %v1361_v30 = vld [vmem:[#allocation2 + $0x8] sm:$0xff] }
 0x3c2   :  { %v1294_v22 = vunpack.i.l.bf16 %v1293_v37 }
 0x3c3   :  { %v728_v14 = vsel %vm198_vm0, %v1250_v21, %v1254_v31  ;;  %v863_v6 = vsel %vm277_vm5, %v851_v25, 0  ;;  %v727_v54 = vsel %vm198_vm0, %v1254_v31, %v1255_v35 }
 0x3c4   :  { %v1932_v38 = vpop.permute.xlu1 %1257  ;;  %v834_v42 = vsel %vm277_vm5, %v728_v14, %v1451_v0  ;;  %v1940_v43 = vpop.permute.xlu0 %1302  ;;  %v835_v28 = vsel %vm277_vm5, %v727_v54, %v804_v53 }
 0x3c5   :  { %v852_v39 = vpack.c.bf16 %v834_v42, %v834_v42  ;;  %v1260_v48 = vunpack.i.h.bf16 %v1932_v38  ;;  %v1259_v49 = vunpack.i.l.bf16 %v1932_v38  ;;  %v2260_v51 = vunpack.i.l.bf16 %v1940_v43 }
 0x3c6   :  { %v1305_v31 = vunpack.i.h.bf16 %v1940_v43 }
 0x3c7   :  { %1122 = vmatprep.subr.msk.bf16.mxu1 %vm277_vm5, %v852_v39  ;;  %v674_v23 = vsel %vm141_vm1, %v1259_v49, %v1260_v48 }
 0x3c8   :  { %v1937_v41 = vpop.permute.xlu1 %1262  ;;  %891 = vmatpush1.bf16.msra.mxu1 %v863_v6  ;;  %v1947_v0 = vpop.permute.xlu0 %1312  ;;  %v774_v60 = vrot.slane %v674_v23, 4 }
 0x3c9   :  { %v1265_v50 = vunpack.i.h.bf16 %v1937_v41  ;;  %v1264_v58 = vunpack.i.l.bf16 %v1937_v41  ;;  %v1314_v23 = vunpack.i.l.bf16 %v1947_v0 }
 0x3ca   :  { %v822_v21 = vsel %vm277_vm5, %v1853_v18, %v774_v60 }
 0x3cb   :  { %v710_v56 = vsel %vm179_vm3, %v1264_v58, %v1265_v50 }
 0x3cc   :  { %v1942_v45 = vpop.permute.xlu1 %1267  ;;  %v1978_v24 = vpop.permute.xlu0 %1322  ;;  %v792_v29 = vrot.slane %v710_v56, 4  ;;  %v853_v56 = vpack.c.bf16 %v835_v28, %v835_v28 }
 0x3cd   :  { %v1269_v63 = vunpack.i.l.bf16 %v1942_v45  ;;  %v1270_v38 = vunpack.i.h.bf16 %v1942_v45 }
 0x3cf   :  { %v675_v57 = vsel %vm141_vm1, %v1269_v63, %v1259_v49  ;;  %v657_v49 = vsel %vm122_vm6, %v1294_v22, %v1295_v52  ;;  %v673_v60 = vsel %vm141_vm1, %v1260_v48, %v1270_v38 }
 0x3d0   :  { %v1951_v59 = vpop.permute.xlu1 %1272  ;;  %v773_v4 = vrot.slane %v675_v57, 4  ;;  %v1333_v18 = vpop.permute.xlu0 %1332  ;;  %v2020_v57 = vsel %vm122_vm6, %v1295_v52, %v1305_v31  ;;  %v805_v52 = vcombine.low %v1477_v8, %v1477_v8 }
 0x3d1   :  { %v1274_v19 = vunpack.i.l.bf16 %v1951_v59  ;;  %v1334_v53 = vunpack.i.l.bf16 %v1333_v18 }
 0x3d2   :  { %v821_v14 = vsel %vm277_vm5, %v1850_v7, %v773_v4  ;;  %v2012_v7 = vsel %vm122_vm6, %v2260_v51, %v1294_v22  ;;  %v1285_v4 = vunpack.i.h.bf16 %v1920_v27 }
 0x3d3   :  { %v711_v10 = vsel %vm179_vm3, %v1274_v19, %v1264_v58  ;;  %v1315_v58 = vunpack.i.h.bf16 %v1947_v0  ;;  %v672_v8 = vsel %vm141_vm1, %v1270_v38, %v1334_v53 }
 0x3d4   :  { %v1965_v32 = vpop.permute.xlu1 %1277  ;;  %v791_v5 = vrot.slane %v711_v10, 4  ;;  %v1335_v10 = vunpack.i.h.bf16 %v1333_v18 }
 0x3d5   :  { %v1280_v61 = vunpack.i.h.bf16 %v1965_v32  ;;  %v1279_v47 = vunpack.i.l.bf16 %v1965_v32  ;;  %v639_v48 = vsel %vm103_vm8, %v1314_v23, %v1315_v58  ;;  %v2146_v32 = vld [vmem:[%s2257_s3] sm:$0x3] }
 0x3d7   :  { %v692_v1 = vsel %vm160_vm4, %v1279_v47, %v1280_v61  ;;  %v693_v2 = vsel %vm160_vm4, %v1284_v17, %v1279_v47  ;;  %v756_v47 = vrot.slane %v657_v49, 4  ;;  %v1325_v49 = vunpack.i.h.bf16 %v1978_v24 }
 0x3d8   :  { %v1990_v46 = vpop.permute.xlu1 %1287  ;;  %v828_v34 = vsel %vm277_vm5, %v692_v1, %v792_v29  ;;  %v827_v37 = vsel %vm277_vm5, %v693_v2, %v791_v5  ;;  %v755_v29 = vrot.slane %v2012_v7, 4  ;;  %v1275_v5 = vunpack.i.h.bf16 %v1951_v59 }
 0x3d9   :  { %v846_v55 = vpack.c.bf16 %v828_v34, %v822_v21  ;;  %v1290_v42 = vunpack.i.h.bf16 %v1990_v46  ;;  %v1289_v25 = vunpack.i.l.bf16 %v1990_v46  ;;  %v845_v39 = vpack.c.bf16 %v827_v37, %v821_v14  ;;  %v1343_v37 = vpop.permute.xlu0 %1342 }
 0x3da   :  { %v775_v34 = vrot.slane %v673_v60, 4  ;;  %v676_v14 = vsel %vm141_vm1, %v1335_v10, %v1269_v63  ;;  %v671_v7 = vsel %vm141_vm1, %v1334_v53, %v1335_v10  ;;  %v816_v45 = vsel %vm277_vm5, %v639_v48, %v756_v47 }
 0x3db   :  { %892 = vmatprep.subr.bf16.mxu1 %v846_v55  ;;  %v621_v54 = vsel %vm84_vm7, %v1289_v25, %v1290_v42  ;;  %v869_v55 = vsel %vm277_vm5, %v853_v56, 0  ;;  %v2065_v63 = vsel %vm179_vm3, %v1265_v50, %v1275_v5  ;;  %v776_v21 = vrot.slane %v672_v8, 4 }
 0x3dc   :  { %v2004_v6 = vpop.permute.xlu1 %1297  ;;  %893 = vmatpush1.bf16.msra.mxu1 %v845_v39  ;;  %v738_v28 = vrot.slane %v621_v54, 4  ;;  %v778_v11 = vrot.slane %v676_v14, 4  ;;  %v1344_v10 = vunpack.i.l.bf16 %v1343_v37  ;;  %v1324_v53 = vunpack.i.l.bf16 %v1978_v24 }
 0x3dd   :  { %v1299_v39 = vunpack.i.l.bf16 %v2004_v6  ;;  %v2078_v50 = vsel %vm277_vm5, %v1859_v62, %v775_v34  ;;  %v777_v48 = vrot.slane %v671_v7, 4  ;;  %v2090_v14 = vpop.permute.xlu0 %647 }
 0x3de   :  { %v826_v7 = vsel %vm277_vm5, %v1868_v12, %v778_v11  ;;  %v655_v11 = vsel %vm122_vm6, %v1305_v31, %v2090_v14  ;;  %v1300_v12 = vunpack.i.h.bf16 %v2004_v6  ;;  %v691_v31 = vsel %vm160_vm4, %v1280_v61, %v1285_v4 }
 0x3df   :  { %v622_v47 = vsel %vm84_vm7, %v1299_v39, %v1289_v25  ;;  %v758_v61 = vrot.slane %v655_v11, 4 }
 0x3e0   :  { %v2030_v22 = vpop.permute.xlu1 %1307  ;;  %v620_v59 = vsel %vm84_vm7, %v1290_v42, %v1300_v12 }
 0x3e1   :  { %v2262_v1 = vunpack.i.h.bf16 %v2030_v22  ;;  %v1309_v2 = vunpack.i.l.bf16 %v2030_v22  ;;  %v739_v11 = vrot.slane %v620_v59, 4 }
 0x3e3   :  { %v603_v18 = vsel %vm65_vm9, %v1309_v2, %v2262_v1  ;;  %v1345_v1 = vunpack.i.h.bf16 %v1343_v37  ;;  %v604_v62 = vsel %vm65_vm9, %v1324_v53, %v1309_v2  ;;  %v737_v37 = vrot.slane %v622_v47, 4 }
 0x3e4   :  { %v1318_v56 = vpop.permute.xlu1 %1317  ;;  %v810_v38 = vsel %vm277_vm5, %v603_v18, %v738_v28  ;;  %v824_v18 = vsel %vm277_vm5, %v1856_v20, %v776_v21 }
 0x3e5   :  { %v1320_v60 = vunpack.i.h.bf16 %v1318_v56  ;;  %v1319_v54 = vunpack.i.l.bf16 %v1318_v56  ;;  %v840_v51 = vpack.c.bf16 %v816_v45, %v810_v38  ;;  %v690_v56 = vsel %vm160_vm4, %v1285_v4, %v1344_v10  ;;  %v1362_v38 = vld [vmem:[#allocation2 + $0x10] sm:$0xff] }
 0x3e7   :  { %v726_v41 = vsel %vm198_vm0, %v1255_v35, %v1319_v54  ;;  %894 = vmatprep.subr.bf16.mxu1 %v840_v51  ;;  %v725_v28 = vsel %vm198_vm0, %v1319_v54, %v1320_v60  ;;  %v730_v25 = vsel %vm198_vm0, %v1320_v60, %v1249_v26  ;;  %v793_v51 = vrot.slane %v2065_v63, 4 }
 0x3e8   :  { %v2086_v8 = vpop.permute.xlu1 %1327  ;;  %v836_v35 = vsel %vm277_vm5, %v726_v41, %v1361_v30  ;;  %v689_v26 = vsel %vm160_vm4, %v1344_v10, %v1345_v1  ;;  %v838_v45 = vsel %vm277_vm5, %v730_v25, %v1362_v38  ;;  %v837_v20 = vsel %vm277_vm5, %v725_v28, %v805_v52 }
 0x3e9   :  { %v1329_v34 = vunpack.i.l.bf16 %v2086_v8  ;;  %v854_v16 = vpack.c.bf16 %v836_v35, %v836_v35  ;;  %v809_v63 = vsel %vm277_vm5, %v604_v62, %v737_v37  ;;  %v1330_v60 = vunpack.i.h.bf16 %v2086_v8 }
 0x3ea   :  { %v694_v52 = vsel %vm160_vm4, %v1345_v1, %v1284_v17  ;;  %v855_v41 = vpack.c.bf16 %v837_v20, %v837_v20  ;;  %v825_v17 = vsel %vm277_vm5, %v1883_v13, %v777_v48  ;;  %v829_v13 = vsel %vm277_vm5, %v691_v31, %v793_v51  ;;  %v630_v48 = vpop.permute.xlu0 %629 }
 0x3eb   :  { %v640_v2 = vsel %vm103_vm8, %v1329_v34, %v1314_v23  ;;  %1124 = vmatprep.subr.msk.bf16.mxu0 %vm277_vm5, %v854_v16  ;;  %v637_v0 = vsel %vm103_vm8, %v1330_v60, %v630_v48  ;;  %v2263_v37 = vunpack.i.h.bf16 %v2030_v22  ;;  %v2264_v20 = vmov 0  }
 0x3ec   :  { %v1338_v21 = vpop.permute.xlu1 %1337  ;;  %932 = vmatpush1.bf16.msra.mxu0 %v869_v55  ;;  %v815_v23 = vsel %vm277_vm5, %v640_v2, %v755_v29  ;;  %v856_v55 = vpack.c.bf16 %v838_v45, %v838_v45  ;;  %v875_v35 = vsel %vm277_vm5, %v855_v41, 0  ;;  %v2265_v22 = vrot.slane %v2020_v57, 4 }
 0x3ed   :  { %v1340_v54 = vunpack.i.h.bf16 %v1338_v21  ;;  %v1339_v10 = vunpack.i.l.bf16 %v1338_v21  ;;  %v839_v47 = vpack.c.bf16 %v815_v23, %v809_v63 }
 0x3ef   :  { %v707_v29 = vsel %vm179_vm3, %v1339_v10, %v1340_v54  ;;  %v708_v28 = vsel %vm179_vm3, %v1275_v5, %v1339_v10  ;;  %v712_v27 = vsel %vm179_vm3, %v1340_v54, %v1274_v19  ;;  %895 = vmatpush1.bf16.msra.mxu1 %v839_v47  ;;  %v638_v19 = vsel %vm103_vm8, %v1315_v58, %v1330_v60 }
 0x3f0   :  { %v794_v4 = vrot.slane %v708_v28, 4  ;;  %v795_v1 = vrot.slane %v707_v29, 4  ;;  %v796_v25 = vrot.slane %v712_v27, 4  ;;  %v1348_v30 = vpop.permute.xlu1 %1347  ;;  %1126 = vmatprep.subr.msk.bf16.mxu1 %vm277_vm5, %v856_v55  ;;  %v817_v21 = vsel %vm277_vm5, %v638_v19, %v2265_v22 }
 0x3f1   :  { %v1349_v5 = vunpack.i.l.bf16 %v1348_v30  ;;  %v1350_v16 = vunpack.i.h.bf16 %v1348_v30  ;;  %v2266_v10 = vunpack.i.l.bf16 %v1940_v43 }
 0x3f2   :  { %1123 = vmatmul.mubr.msk.bf16.vlgmr.msra.gmra.mxu1 %vm858_vm11, %v2146_v32  ;;  %v830_v62 = vsel %vm277_vm5, %v690_v56, %v794_v4  ;;  %v832_v46 = vsel %vm277_vm5, %v694_v52, %v796_v25  ;;  %v831_v42 = vsel %vm277_vm5, %v689_v26, %v795_v1  ;;  %v602_v56 = vsel %vm65_vm9, %v2263_v37, %v1325_v49 }
 0x3f3   :  { %v619_v58 = vsel %vm84_vm7, %v1300_v12, %v1349_v5  ;;  %973 = vmatpush1.bf16.msra.mxu1 %v875_v35  ;;  %v848_v51 = vpack.c.bf16 %v830_v62, %v824_v18  ;;  %v850_v45 = vpack.c.bf16 %v832_v46, %v826_v7  ;;  %v847_v26 = vpack.c.bf16 %v829_v13, %v2078_v50 }
 0x3f4   :  { %v740_v2 = vrot.slane %v619_v58, 4  ;;  %v594_v38 = vpop.permute.xlu1 %593  ;;  %994 = vmatprep.mubr.bf16.mxu1 %v2264_v20  ;;  %v849_v12 = vpack.c.bf16 %v831_v42, %v825_v17  ;;  %v818_v50 = vsel %vm277_vm5, %v637_v0, %v758_v61  ;;  %v617_v7 = vsel %vm84_vm7, %v1350_v16, %v1299_v39  ;;  %v596_v39 = vpop.permute.xlu0 %595 }
 0x3f5   :  { %v601_v18 = vsel %vm65_vm9, %v1325_v49, %v594_v38  ;;  %933 = vmatprep.subr.bf16.mxu0 %v848_v51  ;;  %974 = vmatprep.subr.bf16.mxu1 %v850_v45  ;;  %v618_v49 = vsel %vm84_vm7, %v1349_v5, %v1350_v16  ;;  %v811_v57 = vsel %vm277_vm5, %v602_v56, %v739_v11  ;;  %v742_v31 = vrot.slane %v617_v7, 4 }
 0x3f6   :  { %v812_v63 = vsel %vm277_vm5, %v601_v18, %v740_v2  ;;  %934 = vmatpush1.bf16.msra.mxu0 %v847_v26  ;;  %v841_v54 = vpack.c.bf16 %v817_v21, %v811_v57  ;;  %v741_v52 = vrot.slane %v618_v49, 4  ;;  %v600_v55 = vsel %vm65_vm9, %v594_v38, %v596_v39 }
 0x3f7   :  { %975 = vmatpush1.bf16.msra.mxu1 %v849_v12  ;;  %v842_v23 = vpack.c.bf16 %v818_v50, %v812_v63  ;;  %v599_v43 = vsel %vm65_vm9, %v596_v39, %v1324_v53 }
 0x3f8   :  { %v650_v60 = vpop.permute.xlu1 %649  ;;  %v813_v17 = vsel %vm277_vm5, %v600_v55, %v741_v52  ;;  %v814_v4 = vsel %vm277_vm5, %v599_v43, %v742_v31 }
 0x3f9   :  { %v653_v47 = vsel %vm122_vm6, %v650_v60, %v2266_v10  ;;  %v654_v6 = vsel %vm122_vm6, %v2090_v14, %v650_v60  ;;  %935 = vmatprep.subr.bf16.mxu0 %v842_v23 }
 0x3fa   :  { %936 = vmatpush1.bf16.msra.mxu0 %v841_v54  ;;  %v759_v41 = vrot.slane %v654_v6, 4  ;;  %v760_v29 = vrot.slane %v653_v47, 4 }
 0x3fc   :  { %v632_v28 = vpop.permute.xlu1 %631 }
 0x3fd   :  { %v635_v14 = vsel %vm103_vm8, %v632_v28, %v1329_v34  ;;  %v636_v27 = vsel %vm103_vm8, %v630_v48, %v632_v28  ;;  %1125 = vmatmul.mubr.msk.bf16.vlgmr.msra.gmra.mxu0 %vm858_vm11, %v2146_v32 }
 0x3fe   :  { %v819_v61 = vsel %vm277_vm5, %v636_v27, %v759_v41  ;;  %v820_v24 = vsel %vm277_vm5, %v635_v14, %v760_v29 }
 0x3ff   :  { %v843_v53 = vpack.c.bf16 %v819_v61, %v813_v17  ;;  %v844_v1 = vpack.c.bf16 %v820_v24, %v814_v4  ;;  %v41_v24 = vld [vmem:[%s2258_s4 + $0xc] sm:$0xf] }
 0x401   :  { %976 = vmatprep.subr.bf16.mxu1 %v844_v1 }
 0x402   :  { %977 = vmatpush1.bf16.msra.mxu1 %v843_v53 }
 0x405   :  { %1127 = vmatmul.mubr.msk.bf16.vlgmr.msra.gmra.mxu1 %vm858_vm11, %v2146_v32 }
 0x4b2   :  { %v914_v15 = vpop.f32.mrf.mxu1 }
 0x4b3   :  { %v1003_v25 = vmul.f32 %v914_v15, %v1807_v3 }
 0x4b4   :  { %v916_v8 = vpop.f32.mrf.mxu1 }
 0x4b5   :  { %v1004_v30 = vmul.f32 %v916_v8, %v1809_v9  ;;  %v1009_v19 = vsel %vm277_vm5, %v1003_v25, 0.0 }
 0x4b6   :  { %v918_v34 = vpop.f32.mrf.mxu1 }
 0x4b7   :  { %v1010_v5 = vsel %vm277_vm5, %v1004_v30, 0.0 }
 0x4b8   :  { %v919_v59 = vpop.f32.mrf.mxu1  ;;  %v1011_v35 = vadd.f32 %v1010_v5, %v1009_v19 }
 0x4bd   :  { %v955_v13 = vpop.f32.mrf.mxu0 }
 0x4be   :  { %v1005_v48 = vmul.f32 %v955_v13, %v1813_v36 }
 0x4bf   :  { %v957_v62 = vpop.f32.mrf.mxu0 }
 0x4c0   :  { %v1012_v46 = vsel %vm277_vm5, %v1005_v48, 0.0  ;;  %v1006_v32 = vmul.f32 %v957_v62, %v1817_v44 }
 0x4c1   :  { %v959_v42 = vpop.f32.mrf.mxu0  ;;  %v1013_v0 = vadd.f32 %v1012_v46, %v1011_v35 }
 0x4c2   :  { %v1014_v58 = vsel %vm277_vm5, %v1006_v32, 0.0 }
 0x4c3   :  { %v960_v16 = vpop.f32.mrf.mxu0  ;;  %v1015_v56 = vadd.f32 %v1014_v58, %v1013_v0 }
 0x4c5   :  { %v996_v51 = vpop.f32.mrf.mxu1 }
 0x4c6   :  { %v1007_v37 = vmul.f32 %v996_v51, %v1822_v33 }
 0x4c7   :  { %v998_v2 = vpop.f32.mrf.mxu1 }
 0x4c8   :  { %v1016_v38 = vsel %vm277_vm5, %v1007_v37, 0.0  ;;  %v1008_v45 = vmul.f32 %v998_v2, %v1825_v40 }
 0x4c9   :  { %v1000_v26 = vpop.f32.mrf.mxu1  ;;  %v1017_v20 = vadd.f32 %v1016_v38, %v1015_v56 }
 0x4ca   :  { %v1018_v11 = vsel %vm277_vm5, %v1008_v45, 0.0 }
 0x4cb   :  { %v1001_v18 = vpop.f32.mrf.mxu1  ;;  %v1019_v12 = vadd.f32 %v1018_v11, %v1017_v20 }
 0x4cd   :  { %1020 = vadd.xlane.f32.xlu0 %v1019_v12 }
 0x556   :  { %v1021_v22 = vpop.xlane.xlu0 %1020 }
 0x557   :  { %v1022_v21 = vmul.f32 0.001953125, %v1021_v22 }
 0x559   :  { %v1023_v63 = vsub.f32 %v914_v15, %v1022_v21  ;;  %v1024_v50 = vsub.f32 %v916_v8, %v1022_v21  ;;  %v1025_v7 = vsub.f32 %v955_v13, %v1022_v21  ;;  %v1026_v49 = vsub.f32 %v957_v62, %v1022_v21  ;;  %v40_v15 = vld [vmem:[%s2258_s4 + $0x8] sm:$0xf]  ;;  %s1417_s4 = smov [#allocation5]  }
 0x55a   :  { %v1027_v23 = vsub.f32 %v996_v51, %v1022_v21  ;;  %v1028_v57 = vsub.f32 %v998_v2, %v1022_v21  ;;  %s1107_s16 = sshll.u32 %s1417_s4, 4  ;;  %s1108_s16 = int_to_ptr.vmem [resolvable:$true] %s1107_s16 }
 0x55b   :  { %v1029_v60 = vmul.f32 %v1023_v63, %v1807_v3  ;;  %v1030_v54 = vmul.f32 %v1024_v50, %v1809_v9  ;;  %v1031_v10 = vmul.f32 %v1025_v7, %v1813_v36  ;;  %v1032_v47 = vmul.f32 %v1026_v49, %v1817_v44  ;;  %s1383_s17 = scalar_lea.vmem %s1108_s16, 384  ;;  %p1388_p6 = scmp.lt.s32.totalorder %s1108_s16, %s1108_s16 }
 0x55c   :  { %v1033_v6 = vmul.f32 %v1027_v23, %v1822_v33  ;;  %v1034_v55 = vmul.f32 %v1028_v57, %v1825_v40  ;;  %p1384_p5 = scmp.ne.s32.totalorder %s1108_s16, %s1383_s17  ;;  %p1389_p7 = scmp.lt.s32.totalorder %s1383_s17, %s1383_s17 }
 0x55d   :  { %v1035_v39 = vmul.f32 %v1029_v60, %v1029_v60  ;;  %v1036_v52 = vmul.f32 %v1030_v54, %v1030_v54  ;;  %v1037_v31 = vmul.f32 %v1031_v10, %v1031_v10  ;;  %v1038_v41 = vmul.f32 %v1032_v47, %v1032_v47 }
 0x55e   :  { %v1039_v3 = vmul.f32 %v1033_v6, %v1033_v6  ;;  %v1040_v36 = vmul.f32 %v1034_v55, %v1034_v55  ;;  %p1390_p8 = por %p1389_p7, %p1388_p6 }
 0x55f   :  { %v1041_v29 = vsel %vm277_vm5, %v1035_v39, 0.0  ;;  %v1042_v28 = vsel %vm277_vm5, %v1036_v52, 0.0  ;;  %v1044_v9 = vsel %vm277_vm5, %v1037_v31, 0.0  ;;  %v1046_v44 = vsel %vm277_vm5, %v1038_v41, 0.0 }
 0x560   :  { %v1043_v43 = vadd.f32 %v1042_v28, %v1041_v29  ;;  %v1048_v33 = vsel %vm277_vm5, %v1039_v3, 0.0  ;;  %v1050_v61 = vsel %vm277_vm5, %v1040_v36, 0.0  ;;  %p1391_p9 = pnand %p1390_p8, %p1384_p5 }
 0x562   :  { %v1045_v14 = vadd.f32 %v1044_v9, %v1043_v43 }
 0x564   :  { %v1047_v27 = vadd.f32 %v1046_v44, %v1045_v14 }
 0x566   :  { %v1049_v17 = vadd.f32 %v1048_v33, %v1047_v27 }
 0x568   :  { %v1051_v40 = vadd.f32 %v1050_v61, %v1049_v17 }
 0x56a   :  { %1052 = vadd.xlane.f32.xlu1 %v1051_v40 }
 0x57b   :  { %1071 = vperm.xlu1 %1245, %v41_v24  }
 0x5f3   :  { %v1053_v4 = vpop.xlane.xlu1 %1052 }
 0x5f4   :  { %v1054_v53 = vmul.f32 0.001953125, %v1053_v4 }
 0x5f6   :  { %v1055_v1 = vadd.f32 1e-05, %v1054_v53 }
 0x5f7   :  { %v1072_v13 = vpop.permute.xlu1 %1071 }
 0x5f8   :  { %1359 = vrsqrt.f32 %v1055_v1 }
 0x605   :  { %v1360_v8 = vpop.eup %1359 }
 0x606   :  { %v1057_v34 = vmul.f32 %v1360_v8, %v40_v15 }
 0x608   :  { %1060 = vperm.xlu0 %1244, %v1057_v34  }
 0x683   :  { %v1061_v25 = vpop.permute.xlu0 %1060 }
 0x684   :  { %v1063_v30 = vmul.f32 %v1061_v25, %v1023_v63  ;;  %v1064_v59 = vmul.f32 %v1061_v25, %v1024_v50  ;;  %v1065_v19 = vmul.f32 %v1061_v25, %v1025_v7  ;;  %v1066_v5 = vmul.f32 %v1061_v25, %v1026_v49 }
 0x685   :  { %v1067_v48 = vmul.f32 %v1061_v25, %v1027_v23  ;;  %v1068_v35 = vmul.f32 %v1061_v25, %v1028_v57 }
 0x686   :  { %v1074_v62 = vadd.f32 %v1072_v13, %v1063_v30  ;;  %v1075_v46 = vadd.f32 %v1072_v13, %v1064_v59  ;;  %v1076_v32 = vadd.f32 %v1072_v13, %v1065_v19  ;;  %v1077_v42 = vadd.f32 %v1072_v13, %v1066_v5 }
 0x687   :  { %v1078_v0 = vadd.f32 %v1072_v13, %v1067_v48  ;;  %v1079_v16 = vadd.f32 %v1072_v13, %v1068_v35 }
 0x688   :  { %v1080_v58 = vmax.f32 %v1074_v62, 0.0  ;;  %v1081_v51 = vmax.f32 %v1075_v46, 0.0  ;;  %v1082_v37 = vmax.f32 %v1076_v32, 0.0  ;;  %v1083_v56 = vmax.f32 %v1077_v42, 0.0 }
 0x689   :  { %v1084_v2 = vmax.f32 %v1078_v0, 0.0  ;;  %v1085_v38 = vmax.f32 %v1079_v16, 0.0 }
 0x68a   :  { %v1092_v45 = vcombine.low %v1080_v58, %v1081_v51  ;;  %v1093_v26 = vcombine.low %v1082_v37, %v1083_v56 }
 0x68b   :  { %v1094_v20 = vcombine.low %v1084_v2, %v1085_v38 }
 0x68c   :  { %1098 = vst [vmem:[#allocation5] sm:$0xff] %v1092_v45  ;;  %1099 = vst [vmem:[#allocation5 + $0x8] sm:$0xff] %v1093_v26 }
 0x68d   :  { %1100 = vst [vmem:[#allocation5 + $0x10] sm:$0xff] %v1094_v20 }
 0x68e   :  { %1394 = shalt.err (!%p1391_p9)
}
 0x68f   :  { %1110 = dma.vmem_to_hbm [thread:$0]  %s1108_s16, 384, %s2259_s5, [#allocation4]  }
 0x690   :  { %1405 = dma.done.wait [#allocation4], 384  }
 0x691   :  { %1406 = vsyncadd [#allocation4], 4294966912 }
 0x692   :  { %1114 = vsyncpa [#allocation3], 1 }
 0x693   :  { %1115 = vsyncpa [#allocation4], 1 }

</bundles_post_ra>
